<compile_context>
chip_gen: v7x
topology: tpu7x:2x2x1
jax: 0.10.0
libtpu: 0.0.40
codegen_flags: <defaults>
</compile_context>

<pallas_src>
import jax
import jax.numpy as jnp
from jax.experimental import pallas as pl
from jax.experimental.pallas import tpu as pltpu


def _round_up(x, m):
    return ((x + m - 1) // m) * m


def _conv_stats_kernel(patches_ref, w_ref, y_ref, stats_ref):
    # patches: (TM, K_pad) bf16   w: (K_pad, C_pad) bf16
    # y: (TM, C_pad) f32 conv-output tile
    # stats: (1, 2, C_pad) f32 per-tile partial [sum; sum_of_squares]
    y = jnp.dot(patches_ref[...], w_ref[...], preferred_element_type=jnp.float32)
    y_ref[...] = y
    s = jnp.sum(y, axis=0, keepdims=True)          # (1, C_pad)  (XLU reduce)
    ss = jnp.sum(y * y, axis=0, keepdims=True)     # (1, C_pad)
    stats_ref[...] = jnp.concatenate([s, ss], axis=0).reshape(1, 2, y.shape[-1])


def _bn_relu_kernel(y_ref, scale_ref, shift_ref, o_ref):
    # y: (TM, C_pad) f32   scale/shift: (1, C_pad) f32 (resident, const index map)
    o_ref[...] = jnp.maximum(y_ref[...] * scale_ref[...] + shift_ref[...], 0.0)


def conv_bn_relu(x_nchw, weight, bias, gamma, beta, *, tm=512,
                 matmul_dtype=jnp.bfloat16):
    """x_nchw: (N, C_in, H, W); weight: (C_out, C_in, 3, 3) (PyTorch layout).

    tm: rows per M-tile.  512 reaches ~85% of HBM roofline per the measured
    sweep and keeps per-step VMEM ~1 MiB, comfortably inside v7x's 32 MiB
    scoped budget; v6e can take 1024-2048 if desired.
    """
    N, C_in, H, W = x_nchw.shape
    C_out = weight.shape[0]
    kh = kw = 3
    pad = 2
    Ho = H + 2 * pad - kh + 1
    Wo = W + 2 * pad - kw + 1
    M = N * Ho * Wo
    K = kh * kw * C_in

    K_pad = _round_up(K, 128)
    C_pad = _round_up(C_out, 128)
    G = pl.cdiv(M, tm)
    M_pad = G * tm

    # NCHW -> NHWC, zero-pad spatial dims by 2 (plain-JAX glue).
    x = jnp.transpose(x_nchw, (0, 2, 3, 1))
    xp = jnp.pad(x, ((0, 0), (pad, pad), (pad, pad), (0, 0)))

    # im2col: 9 shifted views, flat patch index order = (ki, kj, ci).
    views = [xp[:, ki:ki + Ho, kj:kj + Wo, :]
             for ki in range(kh) for kj in range(kw)]
    patches = jnp.concatenate(views, axis=-1).reshape(M, K)
    # Zero-pad rows (M) and contraction dim (K); padded rows/cols contribute
    # exactly zero to both the conv output and the BN statistics.
    patches = jnp.pad(patches, ((0, M_pad - M), (0, K_pad - K)))
    patches = patches.astype(matmul_dtype)

    # weight (C_out, C_in, 3, 3) -> (ki, kj, ci, C_out) -> (K, C_out), padded.
    w_mat = jnp.transpose(weight, (2, 3, 1, 0)).reshape(K, C_out)
    w_mat = jnp.pad(w_mat, ((0, K_pad - K), (0, C_pad - C_out)))
    w_mat = w_mat.astype(matmul_dtype)

    # ---- Pass 1: tiled conv matmul + per-tile partial BN statistics --------
    yconv, stats = pl.pallas_call(
        _conv_stats_kernel,
        grid=(G,),
        in_specs=[
            pl.BlockSpec((tm, K_pad), lambda i: (i, 0)),
            pl.BlockSpec((K_pad, C_pad), lambda i: (0, 0)),   # weights resident
        ],
        out_specs=[
            pl.BlockSpec((tm, C_pad), lambda i: (i, 0)),
            pl.BlockSpec((1, 2, C_pad), lambda i: (i, 0, 0)),
        ],
        out_shape=[
            jax.ShapeDtypeStruct((M_pad, C_pad), jnp.float32),
            jax.ShapeDtypeStruct((G, 2, C_pad), jnp.float32),
        ],
        compiler_params=pltpu.CompilerParams(
            dimension_semantics=("parallel",)),
    )(patches, w_mat)

    # ---- Tiny glue: reduce stats, fold BN into per-channel scale/shift -----
    # Padded rows/channels contributed zero, so dividing by the true M gives
    # the exact full-batch (N*Ho*Wo) statistics.  Biased variance, eps=1e-5.
    totals = jnp.sum(stats, axis=0)                        # (2, C_pad), f32
    mean = totals[0] / M
    var = jnp.maximum(totals[1] / M - mean * mean, 0.0)
    gamma_p = jnp.pad(gamma.astype(jnp.float32), (0, C_pad - C_out))
    beta_p = jnp.pad(beta.astype(jnp.float32), (0, C_pad - C_out))
    scale = gamma_p * jax.lax.rsqrt(var + 1e-5)
    shift = beta_p - mean * scale
    # NOTE: `bias` is intentionally unused: training-mode BatchNorm subtracts
    # the per-channel batch mean, which cancels the conv bias exactly.
    del bias

    # ---- Pass 2: normalize (single FMA) + ReLU, lane-dense stores ----------
    out_flat = pl.pallas_call(
        _bn_relu_kernel,
        grid=(G,),
        in_specs=[
            pl.BlockSpec((tm, C_pad), lambda i: (i, 0)),
            pl.BlockSpec((1, C_pad), lambda i: (0, 0)),
            pl.BlockSpec((1, C_pad), lambda i: (0, 0)),
        ],
        out_specs=pl.BlockSpec((tm, C_pad), lambda i: (i, 0)),
        out_shape=jax.ShapeDtypeStruct((M_pad, C_pad), jnp.float32),
        compiler_params=pltpu.CompilerParams(
            dimension_semantics=("parallel",)),
    )(yconv, scale.reshape(1, C_pad), shift.reshape(1, C_pad))

    # Strip padding, (M, C_out) -> (N, Ho, Wo, C_out) -> NCHW.
    out = out_flat[:M, :C_out].reshape(N, Ho, Wo, C_out)
    return jnp.transpose(out, (0, 3, 1, 2))


def _reference(x, w, b, g, be):
    """Plain-JAX reference: Conv2d(pad=2) -> train-mode BN -> ReLU."""
    y = jax.lax.conv_general_dilated(
        x, w, window_strides=(1, 1), padding=((2, 2), (2, 2)),
        dimension_numbers=("NCHW", "OIHW", "NCHW"))
    y = y + b.reshape(1, -1, 1, 1)
    mean = jnp.mean(y, axis=(0, 2, 3), keepdims=True)
    var = jnp.mean((y - mean) ** 2, axis=(0, 2, 3), keepdims=True)
    yhat = (y - mean) * jax.lax.rsqrt(var + 1e-5)
    return jnp.maximum(yhat * g.reshape(1, -1, 1, 1) + be.reshape(1, -1, 1, 1), 0.0)


if __name__ == "__main__":
    # Small shapes consistent with the module: batch=2, c_in=4, spatial=16, c_out=8
    N, C_in, H, W = 2, 4, 16, 16
    C_out = 8

    key = jax.random.PRNGKey(0)
    kx, kw_, kb = jax.random.split(key, 3)
    x = jax.random.normal(kx, (N, C_in, H, W), dtype=jnp.float32)

    fan_in = C_in * 3 * 3
    weight = jax.random.normal(kw_, (C_out, C_in, 3, 3), dtype=jnp.float32) * (1.0 / fan_in) ** 0.5
    bias = jax.random.normal(kb, (C_out,), dtype=jnp.float32) * 0.1
    gamma = jnp.ones((C_out,), dtype=jnp.float32)   # BatchNorm2d default weight
    beta = jnp.zeros((C_out,), dtype=jnp.float32)   # BatchNorm2d default bias

    out = conv_bn_relu(x, weight, bias, gamma, beta)
    jax.block_until_ready(out)
    assert out.shape == (N, C_out, H + 2, W + 2), out.shape

    # Numerical sanity check (generous tolerance: matmul operands are bf16).
    ref = _reference(x, weight, bias, gamma, beta)
    max_err = float(jnp.max(jnp.abs(out - ref)))
    assert max_err < 5e-2, max_err

    print("KERNEL_OK")
</pallas_src>

<mosaic_0001>
module attributes {stable_mosaic.version = 11 : i64} {
  func.func @_conv_stats_kernel(%arg0: i32, %arg1: memref<512x128xbf16, #tpu.memory_space<vmem>>, %arg2: memref<128x128xbf16, #tpu.memory_space<vmem>>, %arg3: memref<512x128xf32, #tpu.memory_space<vmem>>, %arg4: memref<1x2x128xf32, #tpu.memory_space<vmem>>) attributes {dimension_semantics = [#tpu.dimension_semantics<parallel>], iteration_bounds = array<i64: 2>, scalar_prefetch = 0 : i64, scratch_operands = 0 : i64, tpu.core_type = #tpu.core_type<tc>, window_params = [{transform_indices = @transform_0, window_bounds = array<i64: 512, 128>}, {pipeline_mode = #tpu.pipeline_mode<synchronous>, transform_indices = @transform_1, window_bounds = array<i64: 128, 128>}, {transform_indices = @transform_2, window_bounds = array<i64: 512, 128>}, {transform_indices = @transform_3, window_bounds = array<i64: 1, 2, 128>}]} {
    %c0 = arith.constant 0 : index
    %c0_0 = arith.constant 0 : index
    %0 = vector.load %arg1[%c0, %c0_0] : memref<512x128xbf16, #tpu.memory_space<vmem>>, vector<512x128xbf16>
    %c0_1 = arith.constant 0 : index
    %c0_2 = arith.constant 0 : index
    %1 = vector.load %arg2[%c0_1, %c0_2] : memref<128x128xbf16, #tpu.memory_space<vmem>>, vector<128x128xbf16>
    %cst = arith.constant dense<0.000000e+00> : vector<512x128xf32>
    %2 = tpu.matmul %0, %1, %cst {dimension_numbers = #tpu.dot_dimension_numbers<[1], [0], [0], [1], [0, 0, 1, 1], [], []>} : vector<512x128xbf16>, vector<128x128xbf16>, vector<512x128xf32> -> vector<512x128xf32>
    %c0_3 = arith.constant 0 : index
    %c0_4 = arith.constant 0 : index
    %3 = vector.load %arg3[%c0_3, %c0_4] : memref<512x128xf32, #tpu.memory_space<vmem>>, vector<512x128xf32>
    tpu.vector_store %arg3[%c0_3, %c0_4], %2 {strides = array<i32>} : memref<512x128xf32, #tpu.memory_space<vmem>>, vector<512x128xf32>,
    %cst_5 = arith.constant dense<0.000000e+00> : vector<128xf32>
    %4 = vector.multi_reduction <add>, %2, %cst_5 [0] : vector<512x128xf32> to vector<128xf32>
    %5 = vector.shape_cast %4 : vector<128xf32> to vector<1x128xf32>
    %6 = arith.mulf %2, %2 : vector<512x128xf32>
    %cst_6 = arith.constant dense<0.000000e+00> : vector<128xf32>
    %7 = vector.multi_reduction <add>, %6, %cst_6 [0] : vector<512x128xf32> to vector<128xf32>
    %8 = vector.shape_cast %7 : vector<128xf32> to vector<1x128xf32>
    %9 = tpu.concatenate %5, %8 in 0 : vector<1x128xf32>, vector<1x128xf32> -> vector<2x128xf32>
    %10 = vector.shape_cast %9 : vector<2x128xf32> to vector<1x2x128xf32>
    %c0_7 = arith.constant 0 : index
    %c0_8 = arith.constant 0 : index
    %c0_9 = arith.constant 0 : index
    %11 = vector.load %arg4[%c0_7, %c0_8, %c0_9] : memref<1x2x128xf32, #tpu.memory_space<vmem>>, vector<1x2x128xf32>
    tpu.vector_store %arg4[%c0_7, %c0_8, %c0_9], %10 {strides = array<i32>} : memref<1x2x128xf32, #tpu.memory_space<vmem>>, vector<1x2x128xf32>,
    return
  }
  func.func @transform_0(%arg0: i32) -> (i32, i32) {
    %c0_i32 = arith.constant 0 : i32
    %c0_i32_0 = arith.constant 0 : i32
    return %arg0, %c0_i32 : i32, i32
  }
  func.func @transform_1(%arg0: i32) -> (i32, i32) {
    %c0_i32 = arith.constant 0 : i32
    %c0_i32_0 = arith.constant 0 : i32
    %c0_i32_1 = arith.constant 0 : i32
    return %c0_i32, %c0_i32_0 : i32, i32
  }
  func.func @transform_2(%arg0: i32) -> (i32, i32) {
    %c0_i32 = arith.constant 0 : i32
    %c0_i32_0 = arith.constant 0 : i32
    return %arg0, %c0_i32 : i32, i32
  }
  func.func @transform_3(%arg0: i32) -> (i32, i32, i32) {
    %c0_i32 = arith.constant 0 : i32
    %c0_i32_0 = arith.constant 0 : i32
    %c0_i32_1 = arith.constant 0 : i32
    return %arg0, %c0_i32, %c0_i32_0 : i32, i32, i32
  }
}

</mosaic_0001>

<bundles_post_ra>
// kernel: tpu_custom_call.1
= control target key start
LH: loop header
LB: loop body
LE: loop exit
PB: predicated region body
PF: predicated region fallthrough
CT: control target
= control target key end

     0   :  { %9 = vsyncpa [#allocation3], 0  ;;  %s2268_s0 = inlined_call_operand.hbm [shape: bf16[1024,128], index: 0, kind: input, shape index: {}]   ;;  %s2269_s1 = inlined_call_operand.hbm [shape: bf16[128,128], index: 1, kind: input, shape index: {}]   ;;  %s2270_s2 = inlined_call_operand.hbm [shape: f32[1024,128], index: 2, kind: output, shape index: {0}]   ;;  %s2271_s3 = inlined_call_operand.hbm [shape: f32[2,2,128], index: 3, kind: output, shape index: {1}]  }
   0x1   :  { %11 = vsyncpa [#allocation3 + $0x1], 0 }
   0x2   :  { %12 = vsyncpa [#allocation6], 0 }
   0x3   :  { %13 = vsyncpa [#allocation4], 0 }
   0x4   :  { %15 = vsyncpa [#allocation4 + $0x1], 0 }
   0x5   :  { %16 = vsyncpa [#allocation9], 0 }
   0x6   :  { %18 = vsyncpa [#allocation9 + $0x1], 0  ;;  %s1736_s12 = smov 0   ;;  %s1738_s13 = smov 0  }
   0x7   :  { %s1740_s14 = smov 0   ;;  %s1742_s15 = smov 0  }
   0x8 LB: > { %s1757_s16 = sadd.s32 4294967295, %s1706_s15   ;;  %s1243_s17 = sadd.s32 4294967294, %s1706_s15   ;;  %s1706_s15 = sphi %s1742_s15, %s2291_s15   ;;  %s1702_s14 = sphi %s1740_s14, %s2290_s14   ;;  %s1698_s13 = sphi %s1738_s13, %s2289_s13   ;;  %s1694_s12 = sphi %s1736_s12, %s2288_s12  }
   0x9   : > { %p44_p0 = scmp.ne.s32.totalorder %s1698_s13, %s1694_s12  ;;  %p2272_p1 = scmp.eq.s32.totalorder %s1757_s16, 0 }
   0xa   : > { %p95_p3 = scmp.eq.s32.totalorder %s1243_s17, 1  ;;  %p1244_p5 = scmp.ge.s32.totalorder %s1706_s15, 1 }
   0xb   : > { %p1766_p4 = por %p2272_p1, %p44_p0  ;;  %p128_p7 = scmp.lt.s32.totalorder %s1706_s15, 3 }
   0xc   : > { %p1771_p6 = por %p95_p3, %p44_p0  ;;  %s1708_s21 = smov [#allocation5]  }
   0xd   : > { %s2275_s18 = scalar_select %p1766_p4, 1, 0 }
   0xe   : > { %s2276_s19 = scalar_select %p1771_p6, 1, 0 }
   0xf   : > { %p1776_p8 = pnand %p1244_p5, %p128_p7  ;;  %s140_s22 = sshll.u32 %s1708_s21, 4  ;;  %s1780_s22 = int_to_ptr.vmem [resolvable:$true] %s140_s22 }
  0x10   : > { %s1792_s24 = sadd.s32 1, %s1706_s15   ;;  %s31_s25 = sadd.s32 1, %s1702_s14 }
  0x11   : > { %s2277_s20 = scalar_select %p1776_p8, 1, 0 }
  0x12   : > { %p1450_p9 = pneg %p1776_p8  ;;  %s28_s26 = ssub.s32 %s1706_s15, %s1792_s24 }
  0x13   : > { %s1546_s29 = scalar_lea.hbm %s2269_s1, 1024 }
  0x14   : > { %p1787_p11 = pnand %p1450_p9, %p2272_p1  ;;  %p1547_p12 = scmp.ne.s32.totalorder %s2269_s1, %s1546_s29 }
  0x15   : > { %p1553_p5 = scmp.lt.u32.totalorder %s1546_s29, %s2269_s1 }
  0x16   : > { %p1548_p13 = pneg %p1787_p11 }
  0x18   : > { %p1549_p0 = pnand %p1548_p13, %p1547_p12 }
  0x1a   : > { %p1550_p3 = pneg %p1549_p0 }
  0x1c   : > { %p1555_p7 = pnand %p1553_p5, %p1550_p3 }
  0x1e   : > { %1558 = shalt.err (!%p1555_p7)
}
  0x1f   : > { %s1559_s7 = scalar_lea.vmem %s1780_s22, 1024  ;;  %p1567_p2 = scmp.lt.s32.totalorder %s1780_s22, %s1780_s22 }
  0x20   : > { %p1560_p9 = scmp.ne.s32.totalorder %s1780_s22, %s1559_s7  ;;  %p1568_p6 = scmp.lt.s32.totalorder %s1559_s7, %s1559_s7 }
  0x22   : > { %p1562_p10 = pnand %p1560_p9, %p1548_p13  ;;  %p1569_p4 = por %p1568_p6, %p1567_p2 }
  0x24   : > { %p1563_p1 = pneg %p1562_p10 }
  0x26   : > { %p1570_p8 = pnand %p1569_p4, %p1563_p1 }
  0x28   : > { %1573 = shalt.err (!%p1570_p8)
}
  0x29   : > { %s1709_s8 = smov 64   ;;  %s1710_s9 = smov 4  }
  0x2a   : > { %1453 = dma.hbm_to_vmem [thread:$0]  (!%p1787_p11), %s2269_s1, 1024, %s1780_s22, [#allocation6], %s1709_s8, %s1709_s8, %s1710_s9  }
  0x2b   : > { %p29_p1 = scmp.eq.s32.totalorder %s28_s26, 0  ;;  %p38_p2 = scmp.ne.s32.totalorder %s1702_s14, %s1698_s13 }
  0x2c   : > { %p39_p4 = scmp.eq.s32.totalorder %s1706_s15, 0  ;;  %p1466_p6 = scmp.lt.s32.totalorder %s1706_s15, 2 }
  0x2d   : > { %s1826_s17 = scalar_select %p29_p1, %s1702_s14, %s31_s25  }
  0x2e   : > { %p40_p8 = por %p39_p4, %p38_p2  ;;  %p2279_p10 = scmp.eq.s32.totalorder %s1757_s16, 1 }
  0x2f   : > { %s154_s23 = sand.u32 1, %s1702_s14   ;;  %s1302_s27 = sshll.u32 %s1706_s15, 12 }
  0x30   : > { %p1830_p12 = por %p2279_p10, %p38_p2  ;;  %s1247_s28 = sshll.u32 %s154_s23, 8 }
  0x31   : > { %s1839_s4 = scalar_lea.hbm %s2268_s0, %s1302_s27  ;;  %s158_s22 = scalar_lea.vmem [#allocation2], %s1247_s28 }
  0x32   : > { %s165_s25 = sshll.u32 %s158_s22, 4  ;;  %p1841_p11 = pnand %p1466_p6, %p40_p8  ;;  %s1845_s25 = int_to_ptr.vmem [resolvable:$true] %s165_s25 }
  0x33   : > { %s1847_s5 = scalar_lea.sflag [#allocation3], %s154_s23  ;;  %s1574_s6 = scalar_lea.hbm %s1839_s4, 4096 }
  0x34   : > { %p1575_p13 = scmp.ne.s32.totalorder %s1839_s4, %s1574_s6  ;;  %p1576_p0 = pneg %p1841_p11 }
  0x35   : > { %s1579_s11 = scalar_lea.hbm %s2268_s0, 8192  ;;  %p1580_p7 = scmp.lt.u32.totalorder %s1839_s4, %s2268_s0 }
  0x36   : > { %p1577_p3 = pnand %p1576_p0, %p1575_p13  ;;  %p1581_p9 = scmp.lt.u32.totalorder %s1579_s11, %s1574_s6 }
  0x37   : > { %p1583_p2 = scmp.lt.u32.totalorder %s1574_s6, %s1839_s4 }
  0x38   : > { %p1578_p5 = pneg %p1577_p3  ;;  %p1582_p1 = por %p1581_p9, %p1580_p7 }
  0x3a   : > { %p1584_p4 = por %p1583_p2, %p1582_p1 }
  0x3c   : > { %p1585_p6 = pnand %p1584_p4, %p1578_p5 }
  0x3e   : > { %1588 = shalt.err (!%p1585_p6)
}
  0x3f   : > { %s1589_s23 = scalar_lea.vmem %s1845_s25, 4096  ;;  %s1711_s29 = smov [#allocation2]  }
  0x40   : > { %p1590_p8 = scmp.ne.s32.totalorder %s1845_s25, %s1589_s23  ;;  %s1594_s30 = sshll.u32 %s1711_s29, 4  ;;  %s1595_s30 = int_to_ptr.vmem [resolvable:$false] %s1594_s30 }
  0x41   : > { %s1596_s22 = scalar_lea.vmem %s1595_s30, 8192  ;;  %p1597_p3 = scmp.lt.s32.totalorder %s1845_s25, %s1595_s30 }
  0x42   : > { %p1592_p10 = pnand %p1590_p8, %p1576_p0  ;;  %p1598_p7 = scmp.lt.s32.totalorder %s1596_s22, %s1589_s23 }
  0x44   : > { %p1593_p13 = pneg %p1592_p10  ;;  %p1599_p9 = por %p1598_p7, %p1597_p3 }
  0x46   : > { %p1600_p1 = pnand %p1599_p9, %p1593_p13 }
  0x48   : > { %1603 = shalt.err (!%p1600_p1)
}
  0x49   : > { %1457 = dma.hbm_to_vmem [thread:$0]  (!%p1841_p11), %s1839_s4, 4096, %s1845_s25, %s1847_s5, %s1709_s8, %s1709_s8, %s1710_s9  }
  0x4a   : > { %p2282_p0 = scmp.ne.s32.totalorder %s2277_s20, 0 }
  0x4b   : > { %s1881_s6 = sand.u32 (!%p2282_p0), 1, %s1698_s13   ;;  %p2283_p5 = scmp.ne.s32.totalorder (!%p2282_p0), %s2275_s18, 0 }
  0x4c   : > { %177 = sbr.rel (%p2282_p0) target bundleno = 501 (0x1f5), region = 28  ;;  %s1251_s7 = sshll.u32 (!%p2282_p0), %s1881_s6, 8 }
  0x4d   : > { %s180_s10 = scalar_lea.sflag (!%p2282_p0), [#allocation3], %s1881_s6  ;;  %s1885_s11 = scalar_lea.vmem (!%p2282_p0), [#allocation2], %s1251_s7 }
  0x53   : > { %1677 = dma.done.wait (%p2283_p5), %s180_s10, 4096  }
  0x54   : > { %1679 = vsyncadd (%p2283_p5), %s180_s10, 4294963200  ;;  %p2284_p11 = scmp.eq.s32.totalorder %s1757_s16, 0 }
  0x56   : > { %1681 = dma.done.wait (%p2284_p11), [#allocation6], 1024   ;;  %p2285_p2 = pmov %p2284_p11 }
  0x57   : > { %v1506_v0 = vld [vmem:[#allocation5] sm:$0xff]   ;;  %v1507_v1 = vld [vmem:[#allocation5 + $0x8] sm:$0xff]   ;;  %v1508_v2 = vld [vmem:[#allocation5 + $0x10] sm:$0xff]   ;;  %s1253_s18 = sshll.u32 %s1881_s6, 9  ;;  %s1303_s8 = sshll.u32 %s1757_s16, 13 }
  0x58   : > { %1683 = vsyncadd (%p2285_p2), [#allocation6], 4294966272  ;;  %1344 = vmatprep.subr.bf16.mxu0 %v1506_v0  ;;  %1424 = vmatprep.subr.bf16.mxu1 %v1506_v0  ;;  %v1509_v3 = vld [vmem:[#allocation5 + $0x18] sm:$0xff]   ;;  %v1514_v4 = vld [vmem:[%s1885_s11] sm:$0xff]   ;;  %s1930_s20 = scalar_lea.vmem [#allocation7], %s1253_s18  ;;  %s2082_s26 = scalar_lea.hbm %s2270_s2, %s1303_s8 }
  0x59   : > { %1345 = vmatpush3.bf16.msra.mxu0 %v1506_v0  ;;  %1432 = vmatpush3.bf16.msra.mxu1 %v1506_v0  ;;  %v1510_v5 = vld [vmem:[#allocation5 + $0x20] sm:$0xff]   ;;  %v1511_v6 = vld [vmem:[#allocation5 + $0x28] sm:$0xff]   ;;  %v1512_v7 = vld [vmem:[#allocation5 + $0x30] sm:$0xff]   ;;  %s1115_s9 = sshll.u32 %s1930_s20, 4  ;;  %s1097_s5 = scalar_lea.sflag [#allocation4], %s1881_s6  ;;  %s2084_s9 = int_to_ptr.vmem [resolvable:$true] %s1115_s9 }
  0x5a   : > { %1346 = vmatprep.subr.bf16.mxu0 %v1507_v1  ;;  %1425 = vmatprep.subr.bf16.mxu1 %v1507_v1  ;;  %v1513_v8 = vld [vmem:[#allocation5 + $0x38] sm:$0xff]   ;;  %v1530_v9 = vld [vmem:[%s1885_s11 + $0x80] sm:$0xff]   ;;  %v1515_v10 = vld [vmem:[%s1885_s11 + $0x8] sm:$0xff]   ;;  %s1604_s27 = scalar_lea.vmem %s2084_s9, 8192  ;;  %s1712_s28 = smov [#allocation7]  }
  0x5b   : > { %1360 = vmatprep.mubr.bf16.mxu0 %v1514_v4  ;;  %1392 = vmatprep.mubr.bf16.mxu1 %v1530_v9  ;;  %v1516_v11 = vld [vmem:[%s1885_s11 + $0x10] sm:$0xff]   ;;  %v1531_v12 = vld [vmem:[%s1885_s11 + $0x88] sm:$0xff]   ;;  %v1517_v14 = vld [vmem:[%s1885_s11 + $0x18] sm:$0xff]   ;;  %p1605_p4 = scmp.ne.s32.totalorder %s2084_s9, %s1604_s27  ;;  %s1608_s23 = sshll.u32 %s1712_s28, 4  ;;  %s1609_s23 = int_to_ptr.vmem [resolvable:$false] %s1608_s23 }
  0x5c   : > { %v1532_v13 = vld [vmem:[%s1885_s11 + $0x90] sm:$0xff]   ;;  %v1518_v15 = vld [vmem:[%s1885_s11 + $0x20] sm:$0xff]   ;;  %v1533_v16 = vld [vmem:[%s1885_s11 + $0x98] sm:$0xff]   ;;  %s1610_s29 = scalar_lea.vmem %s1609_s23, 16384  ;;  %p1611_p10 = scmp.lt.s32.totalorder %s2084_s9, %s1609_s23 }
  0x5d   : > { %1347 = vmatpush3.bf16.msra.mxu0 %v1507_v1  ;;  %1433 = vmatpush3.bf16.msra.mxu1 %v1507_v1  ;;  %v1534_v17 = vld [vmem:[%s1885_s11 + $0xa0] sm:$0xff]   ;;  %v1519_v18 = vld [vmem:[%s1885_s11 + $0x28] sm:$0xff]   ;;  %v1520_v20 = vld [vmem:[%s1885_s11 + $0x30] sm:$0xff]   ;;  %p1606_p6 = pnand %p1605_p4, %p1830_p12  ;;  %p1612_p13 = scmp.lt.s32.totalorder %s1610_s29, %s1604_s27 }
  0x5e   : > { %1348 = vmatprep.subr.bf16.mxu0 %v1508_v2  ;;  %1426 = vmatprep.subr.bf16.mxu1 %v1508_v2  ;;  %v1535_v19 = vld [vmem:[%s1885_s11 + $0xa8] sm:$0xff]   ;;  %v1536_v21 = vld [vmem:[%s1885_s11 + $0xb0] sm:$0xff]   ;;  %v1521_v22 = vld [vmem:[%s1885_s11 + $0x38] sm:$0xff]  }
  0x5f   : > { %v1537_v23 = vld [vmem:[%s1885_s11 + $0xb8] sm:$0xff]   ;;  %v1522_v24 = vld [vmem:[%s1885_s11 + $0x40] sm:$0xff]   ;;  %v1523_v26 = vld [vmem:[%s1885_s11 + $0x48] sm:$0xff]   ;;  %p1607_p8 = pneg %p1606_p6  ;;  %p1613_p3 = por %p1612_p13, %p1611_p10 }
  0x60   : > { %v1538_v25 = vld [vmem:[%s1885_s11 + $0xc0] sm:$0xff]   ;;  %v1539_v27 = vld [vmem:[%s1885_s11 + $0xc8] sm:$0xff]   ;;  %v1524_v28 = vld [vmem:[%s1885_s11 + $0x50] sm:$0xff]  }
  0x61   : > { %1349 = vmatpush3.bf16.msra.mxu0 %v1508_v2  ;;  %1434 = vmatpush3.bf16.msra.mxu1 %v1508_v2  ;;  %v1540_v29 = vld [vmem:[%s1885_s11 + $0xd0] sm:$0xff]   ;;  %v1525_v30 = vld [vmem:[%s1885_s11 + $0x58] sm:$0xff]   ;;  %v1526_v32 = vld [vmem:[%s1885_s11 + $0x60] sm:$0xff]   ;;  %p1614_p7 = pnand %p1613_p3, %p1607_p8 }
  0x62   : > { %1350 = vmatprep.subr.bf16.mxu0 %v1509_v3  ;;  %1427 = vmatprep.subr.bf16.mxu1 %v1509_v3  ;;  %v1541_v31 = vld [vmem:[%s1885_s11 + $0xd8] sm:$0xff]   ;;  %v1542_v33 = vld [vmem:[%s1885_s11 + $0xe0] sm:$0xff]   ;;  %v1527_v34 = vld [vmem:[%s1885_s11 + $0x68] sm:$0xff]  }
  0x63   : > { %v1543_v35 = vld [vmem:[%s1885_s11 + $0xe8] sm:$0xff]   ;;  %v1528_v36 = vld [vmem:[%s1885_s11 + $0x70] sm:$0xff]   ;;  %v1529_v38 = vld [vmem:[%s1885_s11 + $0x78] sm:$0xff]  }
  0x64   : > { %v1544_v37 = vld [vmem:[%s1885_s11 + $0xf0] sm:$0xff]   ;;  %v1545_v39 = vld [vmem:[%s1885_s11 + $0xf8] sm:$0xff]  }
  0x65   : > { %1351 = vmatpush3.bf16.msra.mxu0 %v1509_v3  ;;  %1435 = vmatpush3.bf16.msra.mxu1 %v1509_v3 }
  0x66   : > { %1352 = vmatprep.subr.bf16.mxu0 %v1510_v5  ;;  %1428 = vmatprep.subr.bf16.mxu1 %v1510_v5 }
  0x69   : > { %1353 = vmatpush3.bf16.msra.mxu0 %v1510_v5  ;;  %1436 = vmatpush3.bf16.msra.mxu1 %v1510_v5 }
  0x6a   : > { %1354 = vmatprep.subr.bf16.mxu0 %v1511_v6  ;;  %1429 = vmatprep.subr.bf16.mxu1 %v1511_v6 }
  0x6d   : > { %1355 = vmatpush3.bf16.msra.mxu0 %v1511_v6  ;;  %1437 = vmatpush3.bf16.msra.mxu1 %v1511_v6 }
  0x6e   : > { %1356 = vmatprep.subr.bf16.mxu0 %v1512_v7  ;;  %1430 = vmatprep.subr.bf16.mxu1 %v1512_v7 }
  0x71   : > { %1357 = vmatpush3.bf16.msra.mxu0 %v1512_v7  ;;  %1438 = vmatpush3.bf16.msra.mxu1 %v1512_v7 }
  0x72   : > { %1358 = vmatprep.subr.bf16.mxu0 %v1513_v8  ;;  %1431 = vmatprep.subr.bf16.mxu1 %v1513_v8 }
  0x75   : > { %1359 = vmatpush3.bf16.msra.mxu0 %v1513_v8  ;;  %1439 = vmatpush3.bf16.msra.mxu1 %v1513_v8 }
  0x78   : > { %1361 = vmatmul.mubr.bf16.vlgmr.msra.gmra.mrb[0].mxu0 %v1515_v10  ;;  %1393 = vmatmul.mubr.bf16.vlgmr.msra.gmra.mrb[0].mxu1 %v1531_v12 }
  0x79   : > { %1364 = vmatprep.mubr.bf16.mxu0 %v1516_v11  ;;  %1396 = vmatprep.mubr.bf16.mxu1 %v1532_v13 }
  0x80   : > { %1365 = vmatmul.mubr.bf16.gmra.mrb[4].mxu0 %v1517_v14  ;;  %1397 = vmatmul.mubr.bf16.gmra.mrb[4].mxu1 %v1533_v16 }
  0x81   : > { %1368 = vmatprep.mubr.bf16.mxu0 %v1518_v15  ;;  %1400 = vmatprep.mubr.bf16.mxu1 %v1534_v17 }
  0x88   : > { %1369 = vmatmul.mubr.bf16.gmra.mrb[8].mxu0 %v1519_v18  ;;  %1401 = vmatmul.mubr.bf16.gmra.mrb[8].mxu1 %v1535_v19 }
  0x89   : > { %1372 = vmatprep.mubr.bf16.mxu0 %v1520_v20  ;;  %1404 = vmatprep.mubr.bf16.mxu1 %v1536_v21 }
  0x90   : > { %1373 = vmatmul.mubr.bf16.gmra.mrb[12].mxu0 %v1521_v22  ;;  %1405 = vmatmul.mubr.bf16.gmra.mrb[12].mxu1 %v1537_v23 }
  0x91   : > { %1376 = vmatprep.mubr.bf16.mxu0 %v1522_v24  ;;  %1408 = vmatprep.mubr.bf16.mxu1 %v1538_v25 }
  0x98   : > { %1377 = vmatmul.mubr.bf16.gmra.mrb[16].mxu0 %v1523_v26  ;;  %1409 = vmatmul.mubr.bf16.gmra.mrb[16].mxu1 %v1539_v27 }
  0x99   : > { %1380 = vmatprep.mubr.bf16.mxu0 %v1524_v28  ;;  %1412 = vmatprep.mubr.bf16.mxu1 %v1540_v29 }
  0xa0   : > { %1381 = vmatmul.mubr.bf16.gmra.mrb[20].mxu0 %v1525_v30  ;;  %1413 = vmatmul.mubr.bf16.gmra.mrb[20].mxu1 %v1541_v31 }
  0xa1   : > { %1384 = vmatprep.mubr.bf16.mxu0 %v1526_v32  ;;  %1416 = vmatprep.mubr.bf16.mxu1 %v1542_v33 }
  0xa8   : > { %1385 = vmatmul.mubr.bf16.gmra.mrb[24].mxu0 %v1527_v34  ;;  %1417 = vmatmul.mubr.bf16.gmra.mrb[24].mxu1 %v1543_v35 }
  0xa9   : > { %1388 = vmatprep.mubr.bf16.mxu0 %v1528_v36  ;;  %1420 = vmatprep.mubr.bf16.mxu1 %v1544_v37 }
  0xb0   : > { %1389 = vmatmul.mubr.bf16.gmra.mrb[28].mxu0 %v1529_v38  ;;  %1421 = vmatmul.mubr.bf16.gmra.mrb[28].mxu1 %v1545_v39 }
 0x14b   : > { %v1362_v40 = vpop.f32.mrb[0].mxu0  ;;  %v1928_v41 = vpop.f32.mrb[0].mxu1 }
 0x14c   : > { %829 = vst [vmem:[%s1930_s20 + $0x10] sm:$0xff] %v1362_v40  ;;  %v572_v42 = vpop.f32.mrb[1].mxu0  ;;  %861 = vst [vmem:[%s1930_s20 + $0x110] sm:$0xff] %v1928_v41  ;;  %v1935_v43 = vpop.f32.mrb[1].mxu1  ;;  %v962_v51 = vmul.f32 %v1362_v40, %v1362_v40 }
 0x14d   : > { %827 = vst [vmem:[%s1930_s20] sm:$0xff] %v572_v42  ;;  %v1363_v44 = vpop.f32.mrb[2].mxu0  ;;  %859 = vst [vmem:[%s1930_s20 + $0x100] sm:$0xff] %v1935_v43  ;;  %v1940_v45 = vpop.f32.mrb[2].mxu1  ;;  %v960_v48 = vmul.f32 %v572_v42, %v572_v42 }
 0x14e   : > { %830 = vst [vmem:[%s1930_s20 + $0x18] sm:$0xff] %v1363_v44  ;;  %v575_v46 = vpop.f32.mrb[3].mxu0  ;;  %862 = vst [vmem:[%s1930_s20 + $0x118] sm:$0xff] %v1940_v45  ;;  %v1945_v47 = vpop.f32.mrb[3].mxu1  ;;  %v963_v54 = vmul.f32 %v1363_v44, %v1363_v44 }
 0x14f   : > { %828 = vst [vmem:[%s1930_s20 + $0x8] sm:$0xff] %v575_v46  ;;  %v891_v49 = vadd.f32 %v575_v46, %v572_v42  ;;  %v961_v50 = vmul.f32 %v575_v46, %v575_v46  ;;  %860 = vst [vmem:[%s1930_s20 + $0x108] sm:$0xff] %v1945_v47 }
 0x151   : > { %v892_v52 = vadd.f32 %v1362_v40, %v891_v49  ;;  %v1024_v53 = vadd.f32 %v961_v50, %v960_v48 }
 0x153   : > { %v1025_v55 = vadd.f32 %v1024_v53, %v962_v51  ;;  %v1366_v56 = vpop.f32.mrb[4].mxu0  ;;  %v893_v57 = vadd.f32 %v1363_v44, %v892_v52  ;;  %v1950_v58 = vpop.f32.mrb[4].mxu1 }
 0x154   : > { %833 = vst [vmem:[%s1930_s20 + $0x30] sm:$0xff] %v1366_v56  ;;  %v588_v59 = vpop.f32.mrb[5].mxu0  ;;  %865 = vst [vmem:[%s1930_s20 + $0x130] sm:$0xff] %v1950_v58  ;;  %v1955_v60 = vpop.f32.mrb[5].mxu1  ;;  %v966_v7 = vmul.f32 %v1366_v56, %v1366_v56 }
 0x155   : > { %831 = vst [vmem:[%s1930_s20 + $0x20] sm:$0xff] %v588_v59  ;;  %v894_v61 = vadd.f32 %v893_v57, %v588_v59  ;;  %v964_v62 = vmul.f32 %v588_v59, %v588_v59  ;;  %v1026_v63 = vadd.f32 %v1025_v55, %v963_v54  ;;  %v1367_v0 = vpop.f32.mrb[6].mxu0  ;;  %863 = vst [vmem:[%s1930_s20 + $0x120] sm:$0xff] %v1955_v60  ;;  %v1960_v1 = vpop.f32.mrb[6].mxu1 }
 0x156   : > { %834 = vst [vmem:[%s1930_s20 + $0x38] sm:$0xff] %v1367_v0  ;;  %v591_v2 = vpop.f32.mrb[7].mxu0  ;;  %866 = vst [vmem:[%s1930_s20 + $0x138] sm:$0xff] %v1960_v1  ;;  %v1965_v3 = vpop.f32.mrb[7].mxu1  ;;  %v967_v10 = vmul.f32 %v1367_v0, %v1367_v0 }
 0x157   : > { %v1027_v4 = vadd.f32 %v1026_v63, %v964_v62  ;;  %832 = vst [vmem:[%s1930_s20 + $0x28] sm:$0xff] %v591_v2  ;;  %v895_v5 = vadd.f32 %v894_v61, %v591_v2  ;;  %v965_v6 = vmul.f32 %v591_v2, %v591_v2  ;;  %864 = vst [vmem:[%s1930_s20 + $0x128] sm:$0xff] %v1965_v3 }
 0x159   : > { %v896_v8 = vadd.f32 %v1366_v56, %v895_v5  ;;  %v1028_v9 = vadd.f32 %v1027_v4, %v965_v6 }
 0x15b   : > { %v1029_v11 = vadd.f32 %v1028_v9, %v966_v7  ;;  %v1370_v12 = vpop.f32.mrb[8].mxu0  ;;  %v897_v13 = vadd.f32 %v1367_v0, %v896_v8  ;;  %v1970_v14 = vpop.f32.mrb[8].mxu1 }
 0x15c   : > { %837 = vst [vmem:[%s1930_s20 + $0x50] sm:$0xff] %v1370_v12  ;;  %v604_v15 = vpop.f32.mrb[9].mxu0  ;;  %869 = vst [vmem:[%s1930_s20 + $0x150] sm:$0xff] %v1970_v14  ;;  %v1975_v16 = vpop.f32.mrb[9].mxu1  ;;  %v970_v27 = vmul.f32 %v1370_v12, %v1370_v12 }
 0x15d   : > { %835 = vst [vmem:[%s1930_s20 + $0x40] sm:$0xff] %v604_v15  ;;  %v898_v17 = vadd.f32 %v897_v13, %v604_v15  ;;  %v968_v18 = vmul.f32 %v604_v15, %v604_v15  ;;  %v1030_v19 = vadd.f32 %v1029_v11, %v967_v10  ;;  %v1371_v20 = vpop.f32.mrb[10].mxu0  ;;  %867 = vst [vmem:[%s1930_s20 + $0x140] sm:$0xff] %v1975_v16  ;;  %v1980_v21 = vpop.f32.mrb[10].mxu1 }
 0x15e   : > { %838 = vst [vmem:[%s1930_s20 + $0x58] sm:$0xff] %v1371_v20  ;;  %v607_v22 = vpop.f32.mrb[11].mxu0  ;;  %870 = vst [vmem:[%s1930_s20 + $0x158] sm:$0xff] %v1980_v21  ;;  %v1985_v23 = vpop.f32.mrb[11].mxu1  ;;  %v971_v30 = vmul.f32 %v1371_v20, %v1371_v20 }
 0x15f   : > { %v1031_v24 = vadd.f32 %v1030_v19, %v968_v18  ;;  %836 = vst [vmem:[%s1930_s20 + $0x48] sm:$0xff] %v607_v22  ;;  %v899_v25 = vadd.f32 %v898_v17, %v607_v22  ;;  %v969_v26 = vmul.f32 %v607_v22, %v607_v22  ;;  %868 = vst [vmem:[%s1930_s20 + $0x148] sm:$0xff] %v1985_v23 }
 0x161   : > { %v900_v28 = vadd.f32 %v1370_v12, %v899_v25  ;;  %v1032_v29 = vadd.f32 %v1031_v24, %v969_v26 }
 0x163   : > { %v1033_v31 = vadd.f32 %v1032_v29, %v970_v27  ;;  %v1374_v32 = vpop.f32.mrb[12].mxu0  ;;  %v901_v33 = vadd.f32 %v1371_v20, %v900_v28  ;;  %v1990_v34 = vpop.f32.mrb[12].mxu1 }
 0x164   : > { %841 = vst [vmem:[%s1930_s20 + $0x70] sm:$0xff] %v1374_v32  ;;  %v620_v35 = vpop.f32.mrb[13].mxu0  ;;  %873 = vst [vmem:[%s1930_s20 + $0x170] sm:$0xff] %v1990_v34  ;;  %v1995_v36 = vpop.f32.mrb[13].mxu1  ;;  %v974_v51 = vmul.f32 %v1374_v32, %v1374_v32 }
 0x165   : > { %839 = vst [vmem:[%s1930_s20 + $0x60] sm:$0xff] %v620_v35  ;;  %v902_v37 = vadd.f32 %v901_v33, %v620_v35  ;;  %v972_v38 = vmul.f32 %v620_v35, %v620_v35  ;;  %v1034_v39 = vadd.f32 %v1033_v31, %v971_v30  ;;  %v1375_v40 = vpop.f32.mrb[14].mxu0  ;;  %871 = vst [vmem:[%s1930_s20 + $0x160] sm:$0xff] %v1995_v36  ;;  %v2000_v42 = vpop.f32.mrb[14].mxu1 }
 0x166   : > { %842 = vst [vmem:[%s1930_s20 + $0x78] sm:$0xff] %v1375_v40  ;;  %v623_v44 = vpop.f32.mrb[15].mxu0  ;;  %874 = vst [vmem:[%s1930_s20 + $0x178] sm:$0xff] %v2000_v42  ;;  %v2005_v46 = vpop.f32.mrb[15].mxu1  ;;  %v975_v54 = vmul.f32 %v1375_v40, %v1375_v40 }
 0x167   : > { %v1035_v48 = vadd.f32 %v1034_v39, %v972_v38  ;;  %840 = vst [vmem:[%s1930_s20 + $0x68] sm:$0xff] %v623_v44  ;;  %v903_v49 = vadd.f32 %v902_v37, %v623_v44  ;;  %v973_v50 = vmul.f32 %v623_v44, %v623_v44  ;;  %872 = vst [vmem:[%s1930_s20 + $0x168] sm:$0xff] %v2005_v46 }
 0x169   : > { %v904_v52 = vadd.f32 %v1374_v32, %v903_v49  ;;  %v1036_v53 = vadd.f32 %v1035_v48, %v973_v50 }
 0x16b   : > { %v1037_v55 = vadd.f32 %v1036_v53, %v974_v51  ;;  %v1378_v56 = vpop.f32.mrb[16].mxu0  ;;  %v905_v57 = vadd.f32 %v1375_v40, %v904_v52  ;;  %v2010_v59 = vpop.f32.mrb[16].mxu1 }
 0x16c   : > { %845 = vst [vmem:[%s1930_s20 + $0x90] sm:$0xff] %v1378_v56  ;;  %v636_v61 = vpop.f32.mrb[17].mxu0  ;;  %877 = vst [vmem:[%s1930_s20 + $0x190] sm:$0xff] %v2010_v59  ;;  %v2015_v62 = vpop.f32.mrb[17].mxu1  ;;  %v978_v11 = vmul.f32 %v1378_v56, %v1378_v56 }
 0x16d   : > { %843 = vst [vmem:[%s1930_s20 + $0x80] sm:$0xff] %v636_v61  ;;  %v906_v63 = vadd.f32 %v905_v57, %v636_v61  ;;  %v976_v0 = vmul.f32 %v636_v61, %v636_v61  ;;  %v1038_v2 = vadd.f32 %v1037_v55, %v975_v54  ;;  %v1379_v4 = vpop.f32.mrb[18].mxu0  ;;  %875 = vst [vmem:[%s1930_s20 + $0x180] sm:$0xff] %v2015_v62  ;;  %v2020_v5 = vpop.f32.mrb[18].mxu1 }
 0x16e   : > { %846 = vst [vmem:[%s1930_s20 + $0x98] sm:$0xff] %v1379_v4  ;;  %v639_v6 = vpop.f32.mrb[19].mxu0  ;;  %878 = vst [vmem:[%s1930_s20 + $0x198] sm:$0xff] %v2020_v5  ;;  %v2025_v7 = vpop.f32.mrb[19].mxu1  ;;  %v979_v15 = vmul.f32 %v1379_v4, %v1379_v4 }
 0x16f   : > { %v1039_v8 = vadd.f32 %v1038_v2, %v976_v0  ;;  %844 = vst [vmem:[%s1930_s20 + $0x88] sm:$0xff] %v639_v6  ;;  %v907_v9 = vadd.f32 %v906_v63, %v639_v6  ;;  %v977_v10 = vmul.f32 %v639_v6, %v639_v6  ;;  %876 = vst [vmem:[%s1930_s20 + $0x188] sm:$0xff] %v2025_v7 }
 0x171   : > { %v908_v12 = vadd.f32 %v1378_v56, %v907_v9  ;;  %v1040_v13 = vadd.f32 %v1039_v8, %v977_v10 }
 0x173   : > { %v1041_v17 = vadd.f32 %v1040_v13, %v978_v11  ;;  %v1382_v18 = vpop.f32.mrb[20].mxu0  ;;  %v909_v19 = vadd.f32 %v1379_v4, %v908_v12  ;;  %v2030_v20 = vpop.f32.mrb[20].mxu1 }
 0x174   : > { %849 = vst [vmem:[%s1930_s20 + $0xb0] sm:$0xff] %v1382_v18  ;;  %v652_v22 = vpop.f32.mrb[21].mxu0  ;;  %881 = vst [vmem:[%s1930_s20 + $0x1b0] sm:$0xff] %v2030_v20  ;;  %v2035_v24 = vpop.f32.mrb[21].mxu1  ;;  %v982_v37 = vmul.f32 %v1382_v18, %v1382_v18 }
 0x175   : > { %847 = vst [vmem:[%s1930_s20 + $0xa0] sm:$0xff] %v652_v22  ;;  %v910_v25 = vadd.f32 %v909_v19, %v652_v22  ;;  %v980_v26 = vmul.f32 %v652_v22, %v652_v22  ;;  %v1042_v27 = vadd.f32 %v1041_v17, %v979_v15  ;;  %v1383_v28 = vpop.f32.mrb[22].mxu0  ;;  %879 = vst [vmem:[%s1930_s20 + $0x1a0] sm:$0xff] %v2035_v24  ;;  %v2040_v29 = vpop.f32.mrb[22].mxu1 }
 0x176   : > { %850 = vst [vmem:[%s1930_s20 + $0xb8] sm:$0xff] %v1383_v28  ;;  %v655_v30 = vpop.f32.mrb[23].mxu0  ;;  %882 = vst [vmem:[%s1930_s20 + $0x1b8] sm:$0xff] %v2040_v29  ;;  %v2045_v31 = vpop.f32.mrb[23].mxu1  ;;  %v983_v40 = vmul.f32 %v1383_v28, %v1383_v28 }
 0x177   : > { %v1043_v32 = vadd.f32 %v1042_v27, %v980_v26  ;;  %848 = vst [vmem:[%s1930_s20 + $0xa8] sm:$0xff] %v655_v30  ;;  %v911_v33 = vadd.f32 %v910_v25, %v655_v30  ;;  %v981_v35 = vmul.f32 %v655_v30, %v655_v30  ;;  %880 = vst [vmem:[%s1930_s20 + $0x1a8] sm:$0xff] %v2045_v31 }
 0x179   : > { %v912_v38 = vadd.f32 %v1382_v18, %v911_v33  ;;  %v1044_v39 = vadd.f32 %v1043_v32, %v981_v35 }
 0x17b   : > { %v1045_v44 = vadd.f32 %v1044_v39, %v982_v37  ;;  %v1386_v48 = vpop.f32.mrb[24].mxu0  ;;  %v913_v49 = vadd.f32 %v1383_v28, %v912_v38  ;;  %v2050_v50 = vpop.f32.mrb[24].mxu1 }
 0x17c   : > { %853 = vst [vmem:[%s1930_s20 + $0xd0] sm:$0xff] %v1386_v48  ;;  %v668_v51 = vpop.f32.mrb[25].mxu0  ;;  %885 = vst [vmem:[%s1930_s20 + $0x1d0] sm:$0xff] %v2050_v50  ;;  %v2055_v52 = vpop.f32.mrb[25].mxu1  ;;  %v986_v6 = vmul.f32 %v1386_v48, %v1386_v48 }
 0x17d   : > { %851 = vst [vmem:[%s1930_s20 + $0xc0] sm:$0xff] %v668_v51  ;;  %v914_v53 = vadd.f32 %v913_v49, %v668_v51  ;;  %v984_v54 = vmul.f32 %v668_v51, %v668_v51  ;;  %v1046_v55 = vadd.f32 %v1045_v44, %v983_v40  ;;  %v1387_v56 = vpop.f32.mrb[26].mxu0  ;;  %883 = vst [vmem:[%s1930_s20 + $0x1c0] sm:$0xff] %v2055_v52  ;;  %v2060_v57 = vpop.f32.mrb[26].mxu1 }
 0x17e   : > { %854 = vst [vmem:[%s1930_s20 + $0xd8] sm:$0xff] %v1387_v56  ;;  %v671_v61 = vpop.f32.mrb[27].mxu0  ;;  %886 = vst [vmem:[%s1930_s20 + $0x1d8] sm:$0xff] %v2060_v57  ;;  %v2065_v63 = vpop.f32.mrb[27].mxu1  ;;  %v987_v10 = vmul.f32 %v1387_v56, %v1387_v56 }
 0x17f   : > { %v1047_v0 = vadd.f32 %v1046_v55, %v984_v54  ;;  %852 = vst [vmem:[%s1930_s20 + $0xc8] sm:$0xff] %v671_v61  ;;  %v915_v2 = vadd.f32 %v914_v53, %v671_v61  ;;  %v985_v4 = vmul.f32 %v671_v61, %v671_v61  ;;  %884 = vst [vmem:[%s1930_s20 + $0x1c8] sm:$0xff] %v2065_v63 }
 0x181   : > { %v916_v8 = vadd.f32 %v1386_v48, %v915_v2  ;;  %v1048_v9 = vadd.f32 %v1047_v0, %v985_v4 }
 0x183   : > { %v1049_v11 = vadd.f32 %v1048_v9, %v986_v6  ;;  %v1390_v12 = vpop.f32.mrb[28].mxu0  ;;  %v917_v13 = vadd.f32 %v1387_v56, %v916_v8  ;;  %v2072_v15 = vpop.f32.mrb[28].mxu1 }
 0x184   : > { %857 = vst [vmem:[%s1930_s20 + $0xf0] sm:$0xff] %v1390_v12  ;;  %v684_v17 = vpop.f32.mrb[29].mxu0  ;;  %889 = vst [vmem:[%s1930_s20 + $0x1f0] sm:$0xff] %v2072_v15  ;;  %v2077_v18 = vpop.f32.mrb[29].mxu1 }
 0x185   : > { %855 = vst [vmem:[%s1930_s20 + $0xe0] sm:$0xff] %v684_v17  ;;  %v918_v19 = vadd.f32 %v917_v13, %v684_v17  ;;  %v988_v22 = vmul.f32 %v684_v17, %v684_v17  ;;  %v1050_v25 = vadd.f32 %v1049_v11, %v987_v10  ;;  %v1391_v26 = vpop.f32.mrb[30].mxu0  ;;  %887 = vst [vmem:[%s1930_s20 + $0x1e0] sm:$0xff] %v2077_v18  ;;  %v2089_v27 = vpop.f32.mrb[30].mxu1 }
 0x186   : > { %858 = vst [vmem:[%s1930_s20 + $0xf8] sm:$0xff] %v1391_v26  ;;  %v687_v28 = vpop.f32.mrb[31].mxu0  ;;  %890 = vst [vmem:[%s1930_s20 + $0x1f8] sm:$0xff] %v2089_v27  ;;  %v2094_v30 = vpop.f32.mrb[31].mxu1 }
 0x187   : > { %v1051_v32 = vadd.f32 %v1050_v25, %v988_v22  ;;  %856 = vst [vmem:[%s1930_s20 + $0xe8] sm:$0xff] %v687_v28  ;;  %v919_v33 = vadd.f32 %v918_v19, %v687_v28  ;;  %v989_v35 = vmul.f32 %v687_v28, %v687_v28  ;;  %888 = vst [vmem:[%s1930_s20 + $0x1e8] sm:$0xff] %v2094_v30 }
 0x188   : > { %1617 = shalt.err (!%p1614_p7)
}
 0x189   : > { %s1618_s30 = scalar_lea.hbm %s2082_s26, 8192  ;;  %s1622_s10 = scalar_lea.hbm %s2270_s2, 16384 }
 0x18a   : > { %p1619_p9 = scmp.ne.s32.totalorder %s2082_s26, %s1618_s30  ;;  %p1623_p5 = scmp.lt.u32.totalorder %s2082_s26, %s2270_s2 }
 0x18b   : > { %p1624_p11 = scmp.lt.u32.totalorder %s1622_s10, %s1618_s30  ;;  %p1626_p4 = scmp.lt.u32.totalorder %s1618_s30, %s2082_s26 }
 0x18c   : > { %p1620_p1 = pnand %p1619_p9, %p1830_p12 }
 0x18d   : > { %p1625_p2 = por %p1624_p11, %p1623_p5 }
 0x18e   : > { %p1621_p0 = pneg %p1620_p1 }
 0x18f   : > { %p1627_p6 = por %p1626_p4, %p1625_p2 }
 0x191   : > { %p1628_p8 = pnand %p1627_p6, %p1621_p0 }
 0x193   : > { %1631 = shalt.err (!%p1628_p8)
}
 0x194   : > { %s1713_s20 = smov 128   ;;  %s1714_s8 = smov 8   ;;  %v990_v37 = vmul.f32 %v1390_v12, %v1390_v12  ;;  %v920_v38 = vadd.f32 %v1390_v12, %v919_v33  ;;  %v1052_v39 = vadd.f32 %v1051_v32, %v989_v35  ;;  %v991_v40 = vmul.f32 %v1391_v26, %v1391_v26 }
 0x195   : > { %1446 = dma.vmem_to_hbm [thread:$0]  (%p1830_p12), %s2084_s9, 8192, %s2082_s26, %s1097_s5, %s1713_s20, %s1713_s20, %s1714_s8   ;;  %v992_v49 = vmul.f32 %v1935_v43, %v1935_v43  ;;  %v993_v56 = vmul.f32 %v1945_v47, %v1945_v47  ;;  %v994_v61 = vmul.f32 %v1928_v41, %v1928_v41  ;;  %v995_v4 = vmul.f32 %v1940_v45, %v1940_v45 }
 0x196   : > { %v1053_v44 = vadd.f32 %v1052_v39, %v990_v37  ;;  %v921_v48 = vadd.f32 %v1391_v26, %v920_v38  ;;  %v997_v12 = vmul.f32 %v1965_v3, %v1965_v3  ;;  %v1001_v32 = vmul.f32 %v1985_v23, %v1985_v23  ;;  %s1254_s9 = sshll.u32 %s1881_s6, 1  ;;  %s1299_s4 = sshll.u32 %s1757_s16, 5 }
 0x197   : > { %s214_s25 = scalar_lea.vmem [#allocation8], %s1254_s9  ;;  %vm1093_vm0 = vcmask 1040384   ;;  %s2224_s28 = scalar_lea.hbm %s2271_s3, %s1299_s4 }
 0x198   : > { %v922_v51 = vadd.f32 %v921_v48, %v1935_v43  ;;  %v1054_v53 = vadd.f32 %v1053_v44, %v991_v40  ;;  %v996_v43 = vmul.f32 %v1955_v60, %v1955_v60  ;;  %v1005_v48 = vmul.f32 %v2005_v46, %v2005_v46  ;;  %s1131_s26 = sshll.u32 %s214_s25, 4  ;;  %s1102_s23 = scalar_lea.sflag [#allocation9], %s1881_s6  ;;  %s2226_s26 = int_to_ptr.vmem [resolvable:$true] %s1131_s26 }
 0x199   : > { %s1632_s29 = scalar_lea.vmem %s2226_s26, 32  ;;  %s1715_s16 = smov [#allocation8]  }
 0x19a   : > { %v1055_v54 = vadd.f32 %v1054_v53, %v992_v49  ;;  %v923_v55 = vadd.f32 %v922_v51, %v1945_v47  ;;  %p1633_p10 = scmp.ne.s32.totalorder %s2226_s26, %s1632_s29  ;;  %s1636_s30 = sshll.u32 %s1715_s16, 4  ;;  %s1637_s30 = int_to_ptr.vmem [resolvable:$false] %s1636_s30 }
 0x19b   : > { %s1638_s22 = scalar_lea.vmem %s1637_s30, 64  ;;  %p1639_p7 = scmp.lt.s32.totalorder %s2226_s26, %s1637_s30 }
 0x19c   : > { %v924_v0 = vadd.f32 %v1928_v41, %v923_v55  ;;  %v1056_v2 = vadd.f32 %v1055_v54, %v993_v56  ;;  %v998_v41 = vmul.f32 %v1950_v58, %v1950_v58  ;;  %p1634_p13 = pnand %p1633_p10, %p1830_p12  ;;  %p1640_p9 = scmp.lt.s32.totalorder %s1638_s22, %s1632_s29 }
 0x19e   : > { %v1057_v6 = vadd.f32 %v1056_v2, %v994_v61  ;;  %v925_v8 = vadd.f32 %v1940_v45, %v924_v0  ;;  %v999_v45 = vmul.f32 %v1960_v1, %v1960_v1  ;;  %v1009_v0 = vmul.f32 %v2025_v7, %v2025_v7  ;;  %p1635_p3 = pneg %p1634_p13  ;;  %p1641_p1 = por %p1640_p9, %p1639_p7 }
 0x1a0   : > { %v926_v9 = vadd.f32 %v925_v8, %v1955_v60  ;;  %v1058_v10 = vadd.f32 %v1057_v6, %v995_v4  ;;  %v1000_v60 = vmul.f32 %v1975_v16, %v1975_v16  ;;  %p1642_p0 = pnand %p1641_p1, %p1635_p3 }
 0x1a2   : > { %v1059_v11 = vadd.f32 %v1058_v10, %v996_v43  ;;  %v927_v47 = vadd.f32 %v926_v9, %v1965_v3 }
 0x1a4   : > { %v928_v13 = vadd.f32 %v1950_v58, %v927_v47  ;;  %v1060_v17 = vadd.f32 %v1059_v11, %v997_v12  ;;  %v1002_v58 = vmul.f32 %v1970_v14, %v1970_v14  ;;  %v1013_v11 = vmul.f32 %v2045_v31, %v2045_v31 }
 0x1a6   : > { %v1061_v19 = vadd.f32 %v1060_v17, %v998_v41  ;;  %v929_v22 = vadd.f32 %v1960_v1, %v928_v13  ;;  %v1003_v1 = vmul.f32 %v1980_v21, %v1980_v21 }
 0x1a8   : > { %v930_v25 = vadd.f32 %v929_v22, %v1975_v16  ;;  %v1062_v26 = vadd.f32 %v1061_v19, %v999_v45  ;;  %v1004_v16 = vmul.f32 %v1995_v36, %v1995_v36  ;;  %v1017_v22 = vmul.f32 %v2065_v63, %v2065_v63 }
 0x1aa   : > { %v1063_v28 = vadd.f32 %v1062_v26, %v1000_v60  ;;  %v931_v3 = vadd.f32 %v930_v25, %v1985_v23 }
 0x1ac   : > { %v932_v33 = vadd.f32 %v1970_v14, %v931_v3  ;;  %v1064_v35 = vadd.f32 %v1063_v28, %v1001_v32  ;;  %v1006_v14 = vmul.f32 %v1990_v34, %v1990_v34 }
 0x1ae   : > { %v1065_v37 = vadd.f32 %v1064_v35, %v1002_v58  ;;  %v933_v38 = vadd.f32 %v1980_v21, %v932_v33  ;;  %v1007_v21 = vmul.f32 %v2000_v42, %v2000_v42  ;;  %v1022_v33 = vmul.f32 %v2072_v15, %v2072_v15 }
 0x1b0   : > { %v934_v39 = vadd.f32 %v933_v38, %v1995_v36  ;;  %v1066_v40 = vadd.f32 %v1065_v37, %v1003_v1  ;;  %v1008_v36 = vmul.f32 %v2015_v62, %v2015_v62 }
 0x1b2   : > { %v1067_v44 = vadd.f32 %v1066_v40, %v1004_v16  ;;  %v935_v23 = vadd.f32 %v934_v39, %v2005_v46 }
 0x1b4   : > { %v936_v49 = vadd.f32 %v1990_v34, %v935_v23  ;;  %v1068_v51 = vadd.f32 %v1067_v44, %v1005_v48  ;;  %v1010_v34 = vmul.f32 %v2010_v59, %v2010_v59 }
 0x1b6   : > { %v1069_v53 = vadd.f32 %v1068_v51, %v1006_v14  ;;  %v937_v54 = vadd.f32 %v2000_v42, %v936_v49  ;;  %v1011_v42 = vmul.f32 %v2020_v5, %v2020_v5 }
 0x1b8   : > { %v938_v55 = vadd.f32 %v937_v54, %v2015_v62  ;;  %v1070_v56 = vadd.f32 %v1069_v53, %v1007_v21  ;;  %v1012_v62 = vmul.f32 %v2035_v24, %v2035_v24 }
 0x1ba   : > { %v1071_v61 = vadd.f32 %v1070_v56, %v1008_v36  ;;  %v939_v46 = vadd.f32 %v938_v55, %v2025_v7 }
 0x1bc   : > { %v940_v2 = vadd.f32 %v2010_v59, %v939_v46  ;;  %v1072_v4 = vadd.f32 %v1071_v61, %v1009_v0  ;;  %v1014_v59 = vmul.f32 %v2030_v20, %v2030_v20 }
 0x1be   : > { %v1073_v6 = vadd.f32 %v1072_v4, %v1010_v34  ;;  %v941_v8 = vadd.f32 %v2020_v5, %v940_v2  ;;  %v1015_v5 = vmul.f32 %v2040_v29, %v2040_v29 }
 0x1c0   : > { %v942_v43 = vadd.f32 %v941_v8, %v2035_v24  ;;  %v1074_v9 = vadd.f32 %v1073_v6, %v1011_v42  ;;  %v1016_v24 = vmul.f32 %v2055_v52, %v2055_v52 }
 0x1c2   : > { %v1075_v10 = vadd.f32 %v1074_v9, %v1012_v62  ;;  %v943_v7 = vadd.f32 %v942_v43, %v2045_v31 }
 0x1c4   : > { %v944_v47 = vadd.f32 %v2030_v20, %v943_v7  ;;  %v1076_v12 = vadd.f32 %v1075_v10, %v1013_v11  ;;  %v1018_v20 = vmul.f32 %v2050_v50, %v2050_v50 }
 0x1c6   : > { %v1077_v41 = vadd.f32 %v1076_v12, %v1014_v59  ;;  %v945_v13 = vadd.f32 %v2040_v29, %v944_v47  ;;  %v1019_v29 = vmul.f32 %v2060_v57, %v2060_v57 }
 0x1c8   : > { %v946_v17 = vadd.f32 %v945_v13, %v2055_v52  ;;  %v1078_v45 = vadd.f32 %v1077_v41, %v1015_v5  ;;  %v1020_v52 = vmul.f32 %v2077_v18, %v2077_v18 }
 0x1ca   : > { %v1079_v19 = vadd.f32 %v1078_v45, %v1016_v24  ;;  %v947_v31 = vadd.f32 %v946_v17, %v2065_v63 }
 0x1cc   : > { %v948_v60 = vadd.f32 %v2050_v50, %v947_v31  ;;  %v1080_v25 = vadd.f32 %v1079_v19, %v1017_v22  ;;  %v1021_v50 = vmul.f32 %v2094_v30, %v2094_v30 }
 0x1ce   : > { %v1081_v26 = vadd.f32 %v1080_v25, %v1018_v20  ;;  %v949_v28 = vadd.f32 %v2060_v57, %v948_v60  ;;  %v1023_v57 = vmul.f32 %v2089_v27, %v2089_v27 }
 0x1d0   : > { %v950_v3 = vadd.f32 %v949_v28, %v2077_v18  ;;  %v1082_v32 = vadd.f32 %v1081_v26, %v1019_v29 }
 0x1d2   : > { %v1083_v63 = vadd.f32 %v1082_v32, %v1020_v52  ;;  %v951_v58 = vadd.f32 %v950_v3, %v2094_v30 }
 0x1d4   : > { %v952_v35 = vadd.f32 %v2072_v15, %v951_v58  ;;  %v1084_v1 = vadd.f32 %v1083_v63, %v1021_v50 }
 0x1d6   : > { %v953_v18 = vadd.f32 %v2089_v27, %v952_v35  ;;  %v1085_v37 = vadd.f32 %v1084_v1, %v1022_v33 }
 0x1d8   : > { %v954_v38 = vrot.slane %v953_v18, 4  ;;  %v1086_v16 = vadd.f32 %v1085_v37, %v1023_v57 }
 0x1da   : > { %v955_v39 = vadd.f32 %v954_v38, %v953_v18  ;;  %v1087_v40 = vrot.slane %v1086_v16, 4 }
 0x1dc   : > { %v956_v44 = vrot.slane %v955_v39, 2  ;;  %v1088_v23 = vadd.f32 %v1087_v40, %v1086_v16 }
 0x1de   : > { %v957_v30 = vadd.f32 %v956_v44, %v955_v39  ;;  %v1089_v48 = vrot.slane %v1088_v23, 2 }
 0x1e0   : > { %v958_v14 = vrot.slane %v957_v30, 1  ;;  %v1090_v15 = vadd.f32 %v1089_v48, %v1088_v23 }
 0x1e2   : > { %v1091_v49 = vrot.slane %v1090_v15, 1  ;;  %v959_v27 = vadd.f32 %v958_v14, %v957_v30 }
 0x1e4   : > { %v1092_v51 = vadd.f32 %v1091_v49, %v1090_v15 }
 0x1e6   : > { %v1094_v21 = vsel %vm1093_vm0, %v959_v27, %v1092_v51 }
 0x1e7   : > { %1095 = vst [vmem:[%s214_s25] sm:$0x3] %v1094_v21 }
 0x1e8   : > { %1645 = shalt.err (!%p1642_p0)
}
 0x1e9   : > { %s1646_s6 = scalar_lea.hbm %s2224_s28, 32  ;;  %s1650_s11 = scalar_lea.hbm %s2271_s3, 64 }
 0x1ea   : > { %p1647_p5 = scmp.ne.s32.totalorder %s2224_s28, %s1646_s6  ;;  %p1651_p4 = scmp.lt.u32.totalorder %s2224_s28, %s2271_s3 }
 0x1eb   : > { %p1652_p6 = scmp.lt.u32.totalorder %s1650_s11, %s1646_s6  ;;  %p1654_p10 = scmp.lt.u32.totalorder %s1646_s6, %s2224_s28 }
 0x1ec   : > { %p1648_p11 = pnand %p1647_p5, %p1830_p12 }
 0x1ed   : > { %p1653_p8 = por %p1652_p6, %p1651_p4 }
 0x1ee   : > { %p1649_p2 = pneg %p1648_p11 }
 0x1ef   : > { %p1655_p13 = por %p1654_p10, %p1653_p8 }
 0x1f1   : > { %p1656_p3 = pnand %p1655_p13, %p1649_p2 }
 0x1f3   : > { %1659 = shalt.err (!%p1656_p3)
}
 0x1f4   : > { %1447 = dma.vmem_to_hbm [thread:$0]  (%p1830_p12), %s2226_s26, 32, %s2224_s28, %s1102_s23  }
 0x1f5 PF: > { %s1143_s8 = sand.u32 1, %s1694_s12   ;;  %p2286_p7 = scmp.ne.s32.totalorder %s2276_s19, 0 }
 0x1f6   : > { %p2287_p9 = scmp.ge.s32.totalorder %s1706_s15, 2  ;;  %s1144_s9 = scalar_lea.sflag [#allocation4], %s1143_s8 }
 0x1f8   : > { %p1459_p1 = pnand %p2287_p9, %p2286_p7 }
 0x1fa   : > { %1685 = dma.done.wait (!%p1459_p1), %s1144_s9, 8192  }
 0x1fb   : > { %1687 = vsyncadd (!%p1459_p1), %s1144_s9, 4294959104  ;;  %s1153_s4 = scalar_lea.sflag [#allocation9], %s1143_s8 }
 0x1fc   : > { %1689 = dma.done.wait (!%p1459_p1), %s1153_s4, 32  }
 0x1fd   : > { %1691 = vsyncadd (!%p1459_p1), %s1153_s4, 4294967264  ;;  %p21_p12 = scmp.ge.s32.totalorder %s1792_s24, 4   ;;  %s2288_s12 = smov %s1698_s13 }
 0x1fe   : > { %s2289_s13 = smov %s1702_s14  ;;  %s2290_s14 = smov %s1826_s17 }
 0x1ff   : > { %s2291_s15 = smov %s1792_s24  ;;  %23 = sbr.rel (!%p21_p12) target bundleno = 8 (0x8), region = 94 }
 0x206   :  { %1158 = vsyncpa [#allocation3], 1 }
 0x207   :  { %1160 = vsyncpa [#allocation3 + $0x1], 1 }
 0x208   :  { %1161 = vsyncpa [#allocation6], 1 }
 0x209   :  { %1162 = vsyncpa [#allocation4], 1 }
 0x20a   :  { %1164 = vsyncpa [#allocation4 + $0x1], 1 }
 0x20b   :  { %1165 = vsyncpa [#allocation9], 1 }
 0x20c   :  { %1167 = vsyncpa [#allocation9 + $0x1], 1 }

</bundles_post_ra>
